<compile_context>
chip_gen: v7x
topology: tpu7x:2x2x1
jax: 0.10.0
libtpu: 0.0.40
codegen_flags: <defaults>
</compile_context>

<pallas_src>
import functools

import jax
import jax.numpy as jnp
from jax.experimental import pallas as pl
from jax.experimental.pallas import tpu as pltpu

_EPS = 1e-5
_LANES = 128
_N_FEAT = 10


def _round_up(a, b):
    return (a + b - 1) // b * b


def _smem_spec(n):
    return pl.BlockSpec((n,), lambda i: (0,), memory_space=pltpu.MemorySpace.SMEM)


def _stats_kernel(x_ref, w1_ref, b1_ref, o_ref, *, n_valid, tile_rows):
    """Accumulate per-feature sum and sum-of-squares of relu(w1*x + b1)."""
    t = pl.program_id(0)
    x = x_ref[...]                                   # (tile_rows, 128) f32

    # Mask out the zero-padding at the tail of the flattened batch.
    base = t * (tile_rows * _LANES)
    ridx = jax.lax.broadcasted_iota(jnp.int32, x.shape, 0)
    lidx = jax.lax.broadcasted_iota(jnp.int32, x.shape, 1)
    valid = (base + ridx * _LANES + lidx) < n_valid

    sum_parts = []
    sq_parts = []
    for f in range(_N_FEAT):                         # static unroll, VPU only
        h = jnp.maximum(x * w1_ref[f] + b1_ref[f], 0.0)
        h = jnp.where(valid, h, 0.0)
        sum_parts.append(jnp.sum(h, axis=0, keepdims=True))      # (1, 128)
        sq_parts.append(jnp.sum(h * h, axis=0, keepdims=True))   # (1, 128)
    part = jnp.concatenate(sum_parts + sq_parts, axis=0)          # (2*F, 128)

    @pl.when(t == 0)
    def _():
        o_ref[...] = part

    @pl.when(t > 0)
    def _():
        o_ref[...] += part


def _combine_kernel(x_ref, w1_ref, b1_ref, scale_ref, bias_ref, o_ref):
    """out = sum_f scale[f] * relu(w1[f]*x + b1[f]) + bias  (10 VPU FMAs/elem)."""
    x = x_ref[...]
    acc = jnp.zeros_like(x)
    for f in range(_N_FEAT):
        h = jnp.maximum(x * w1_ref[f] + b1_ref[f], 0.0)
        acc = acc + scale_ref[f] * h
    o_ref[...] = acc + bias_ref[0]


def para10_forward(x, w1, b1, w2, b2, *, tile_rows=512):
    """x: (N, 1) f32; w1, b1, w2: (10,); b2: (1,). Returns (N, 1) f32."""
    n = x.shape[0]
    x = x.astype(jnp.float32)
    w1 = w1.astype(jnp.float32).reshape(_N_FEAT)
    b1 = b1.astype(jnp.float32).reshape(_N_FEAT)
    w2 = w2.astype(jnp.float32).reshape(_N_FEAT)
    b2 = b2.astype(jnp.float32).reshape(1)

    # Lane-dense layout: flatten batch, zero-pad, view as (rows, 128).
    rows = max(_round_up(pl.cdiv(n, _LANES), 8), 8)
    tr = min(tile_rows, rows)
    rows = _round_up(rows, tr)
    num_tiles = rows // tr
    flat = jnp.zeros((rows * _LANES,), jnp.float32).at[:n].set(x.reshape(n))
    x2d = flat.reshape(rows, _LANES)

    # Pass 1: full-batch per-feature sums / sums-of-squares (accumulator axis).
    stats = pl.pallas_call(
        functools.partial(_stats_kernel, n_valid=n, tile_rows=tr),
        out_shape=jax.ShapeDtypeStruct((2 * _N_FEAT, _LANES), jnp.float32),
        grid=(num_tiles,),
        in_specs=[
            pl.BlockSpec((tr, _LANES), lambda i: (i, 0)),
            _smem_spec(_N_FEAT),
            _smem_spec(_N_FEAT),
        ],
        out_specs=pl.BlockSpec((2 * _N_FEAT, _LANES), lambda i: (0, 0)),
        compiler_params=pltpu.CompilerParams(
            dimension_semantics=("arbitrary",)),
    )(x2d, w1, b1)

    # Fold BatchNorm stats and the second Linear into one per-feature scale and
    # a single bias (10-element plain-JAX math; negligible).
    sums = jnp.sum(stats[:_N_FEAT], axis=1)           # (10,)
    sqs = jnp.sum(stats[_N_FEAT:], axis=1)            # (10,)
    mean = sums / n
    var = jnp.maximum(sqs / n - mean * mean, 0.0)     # biased variance
    inv_std = jax.lax.rsqrt(var + _EPS)
    scale = w2 * inv_std                              # (10,)
    bias = b2 - jnp.sum(scale * mean, keepdims=True)  # (1,)

    # Pass 2: normalize + output combine, fully parallel over batch tiles.
    y2d = pl.pallas_call(
        _combine_kernel,
        out_shape=jax.ShapeDtypeStruct((rows, _LANES), jnp.float32),
        grid=(num_tiles,),
        in_specs=[
            pl.BlockSpec((tr, _LANES), lambda i: (i, 0)),
            _smem_spec(_N_FEAT),
            _smem_spec(_N_FEAT),
            _smem_spec(_N_FEAT),
            _smem_spec(1),
        ],
        out_specs=pl.BlockSpec((tr, _LANES), lambda i: (i, 0)),
        compiler_params=pltpu.CompilerParams(
            dimension_semantics=("parallel",)),
    )(x2d, w1, b1, scale, bias)

    return y2d.reshape(-1)[:n].reshape(n, 1)


def init_params(key):
    """nn.Linear-style uniform init (PyTorch layouts flattened to vectors)."""
    k1, k2, k3, k4 = jax.random.split(key, 4)
    # Linear(1, 10): bound = 1/sqrt(fan_in) = 1.0
    w1 = jax.random.uniform(k1, (_N_FEAT,), jnp.float32, -1.0, 1.0)
    b1 = jax.random.uniform(k2, (_N_FEAT,), jnp.float32, -1.0, 1.0)
    # Linear(10, 1): bound = 1/sqrt(10)
    bound = 1.0 / (10.0 ** 0.5)
    w2 = jax.random.uniform(k3, (_N_FEAT,), jnp.float32, -bound, bound)
    b2 = jax.random.uniform(k4, (1,), jnp.float32, -bound, bound)
    return w1, b1, w2, b2


if __name__ == "__main__":
    key = jax.random.PRNGKey(0)
    kx, kp = jax.random.split(key)

    batch = 8
    x = jax.random.normal(kx, (batch, 1), jnp.float32)
    w1, b1, w2, b2 = init_params(kp)

    out = para10_forward(x, w1, b1, w2, b2)
    jax.block_until_ready(out)

    # Pure-JAX reference (same training-mode BatchNorm semantics).
    h = jnp.maximum(x * w1[None, :] + b1[None, :], 0.0)        # (N, 10)
    mu = jnp.mean(h, axis=0, keepdims=True)
    var = jnp.mean((h - mu) ** 2, axis=0, keepdims=True)
    hn = (h - mu) / jnp.sqrt(var + _EPS)
    ref = hn @ w2[:, None] + b2[None, :]                        # (N, 1)

    assert out.shape == (batch, 1)
    assert jnp.allclose(out, ref, atol=1e-4, rtol=1e-4), float(
        jnp.max(jnp.abs(out - ref)))

    print("KERNEL_OK")
</pallas_src>

<mosaic_0001>
module attributes {stable_mosaic.version = 11 : i64} {
  func.func @_stats_kernel(%arg0: i32, %arg1: memref<8x128xf32, #tpu.memory_space<vmem>>, %arg2: memref<10xf32, #tpu.memory_space<smem>>, %arg3: memref<10xf32, #tpu.memory_space<smem>>, %arg4: memref<20x128xf32, #tpu.memory_space<vmem>>) attributes {dimension_semantics = [#tpu.dimension_semantics<arbitrary>], iteration_bounds = array<i64: 1>, scalar_prefetch = 0 : i64, scratch_operands = 0 : i64, tpu.core_type = #tpu.core_type<tc>, window_params = [{transform_indices = @transform_0, window_bounds = array<i64: 8, 128>}, {transform_indices = @transform_1, window_bounds = array<i64: 10>}, {transform_indices = @transform_2, window_bounds = array<i64: 10>}, {pipeline_mode = #tpu.pipeline_mode<synchronous>, transform_indices = @transform_3, window_bounds = array<i64: 20, 128>}]} {
    %c0 = arith.constant 0 : index
    %c0_0 = arith.constant 0 : index
    %0 = vector.load %arg1[%c0, %c0_0] : memref<8x128xf32, #tpu.memory_space<vmem>>, vector<8x128xf32>
    %c1024_i32 = arith.constant 1024 : i32
    %1 = arith.muli %arg0, %c1024_i32 : i32
    %2 = tpu.iota {dimensions = array<i32: 0>} : vector<8x128xi32>
    %3 = tpu.iota {dimensions = array<i32: 1>} : vector<8x128xi32>
    %c128_i32 = arith.constant 128 : i32
    %4 = vector.broadcast %c128_i32 : i32 to vector<8x128xi32>
    %5 = arith.muli %2, %4 : vector<8x128xi32>
    %6 = vector.broadcast %1 : i32 to vector<8x128xi32>
    %7 = arith.addi %6, %5 : vector<8x128xi32>
    %8 = arith.addi %7, %3 : vector<8x128xi32>
    %c8_i32 = arith.constant 8 : i32
    %9 = vector.broadcast %c8_i32 : i32 to vector<8x128xi32>
    %10 = arith.cmpi slt, %8, %9 : vector<8x128xi32>
    %c0_1 = arith.constant 0 : index
    %11 = memref.load %arg2[%c0_1] : memref<10xf32, #tpu.memory_space<smem>>
    %12 = vector.broadcast %11 : f32 to vector<8x128xf32>
    %13 = arith.mulf %0, %12 : vector<8x128xf32>
    %c0_2 = arith.constant 0 : index
    %14 = memref.load %arg3[%c0_2] : memref<10xf32, #tpu.memory_space<smem>>
    %15 = vector.broadcast %14 : f32 to vector<8x128xf32>
    %16 = arith.addf %13, %15 : vector<8x128xf32>
    %cst = arith.constant 0.000000e+00 : f32
    %17 = vector.broadcast %cst : f32 to vector<8x128xf32>
    %18 = arith.maximumf %16, %17 : vector<8x128xf32>
    %cst_3 = arith.constant 0.000000e+00 : f32
    %19 = vector.broadcast %cst_3 : f32 to vector<8x128xf32>
    %20 = arith.select %10, %18, %19 : vector<8x128xi1>, vector<8x128xf32>
    %cst_4 = arith.constant dense<0.000000e+00> : vector<128xf32>
    %21 = vector.multi_reduction <add>, %20, %cst_4 [0] : vector<8x128xf32> to vector<128xf32>
    %22 = vector.shape_cast %21 : vector<128xf32> to vector<1x128xf32>
    %23 = arith.mulf %20, %20 : vector<8x128xf32>
    %cst_5 = arith.constant dense<0.000000e+00> : vector<128xf32>
    %24 = vector.multi_reduction <add>, %23, %cst_5 [0] : vector<8x128xf32> to vector<128xf32>
    %25 = vector.shape_cast %24 : vector<128xf32> to vector<1x128xf32>
    %c1 = arith.constant 1 : index
    %26 = memref.load %arg2[%c1] : memref<10xf32, #tpu.memory_space<smem>>
    %27 = vector.broadcast %26 : f32 to vector<8x128xf32>
    %28 = arith.mulf %0, %27 : vector<8x128xf32>
    %c1_6 = arith.constant 1 : index
    %29 = memref.load %arg3[%c1_6] : memref<10xf32, #tpu.memory_space<smem>>
    %30 = vector.broadcast %29 : f32 to vector<8x128xf32>
    %31 = arith.addf %28, %30 : vector<8x128xf32>
    %cst_7 = arith.constant 0.000000e+00 : f32
    %32 = vector.broadcast %cst_7 : f32 to vector<8x128xf32>
    %33 = arith.maximumf %31, %32 : vector<8x128xf32>
    %cst_8 = arith.constant 0.000000e+00 : f32
    %34 = vector.broadcast %cst_8 : f32 to vector<8x128xf32>
    %35 = arith.select %10, %33, %34 : vector<8x128xi1>, vector<8x128xf32>
    %cst_9 = arith.constant dense<0.000000e+00> : vector<128xf32>
    %36 = vector.multi_reduction <add>, %35, %cst_9 [0] : vector<8x128xf32> to vector<128xf32>
    %37 = vector.shape_cast %36 : vector<128xf32> to vector<1x128xf32>
    %38 = arith.mulf %35, %35 : vector<8x128xf32>
    %cst_10 = arith.constant dense<0.000000e+00> : vector<128xf32>
    %39 = vector.multi_reduction <add>, %38, %cst_10 [0] : vector<8x128xf32> to vector<128xf32>
    %40 = vector.shape_cast %39 : vector<128xf32> to vector<1x128xf32>
    %c2 = arith.constant 2 : index
    %41 = memref.load %arg2[%c2] : memref<10xf32, #tpu.memory_space<smem>>
    %42 = vector.broadcast %41 : f32 to vector<8x128xf32>
    %43 = arith.mulf %0, %42 : vector<8x128xf32>
    %c2_11 = arith.constant 2 : index
    %44 = memref.load %arg3[%c2_11] : memref<10xf32, #tpu.memory_space<smem>>
    %45 = vector.broadcast %44 : f32 to vector<8x128xf32>
    %46 = arith.addf %43, %45 : vector<8x128xf32>
    %cst_12 = arith.constant 0.000000e+00 : f32
    %47 = vector.broadcast %cst_12 : f32 to vector<8x128xf32>
    %48 = arith.maximumf %46, %47 : vector<8x128xf32>
    %cst_13 = arith.constant 0.000000e+00 : f32
    %49 = vector.broadcast %cst_13 : f32 to vector<8x128xf32>
    %50 = arith.select %10, %48, %49 : vector<8x128xi1>, vector<8x128xf32>
    %cst_14 = arith.constant dense<0.000000e+00> : vector<128xf32>
    %51 = vector.multi_reduction <add>, %50, %cst_14 [0] : vector<8x128xf32> to vector<128xf32>
    %52 = vector.shape_cast %51 : vector<128xf32> to vector<1x128xf32>
    %53 = arith.mulf %50, %50 : vector<8x128xf32>
    %cst_15 = arith.constant dense<0.000000e+00> : vector<128xf32>
    %54 = vector.multi_reduction <add>, %53, %cst_15 [0] : vector<8x128xf32> to vector<128xf32>
    %55 = vector.shape_cast %54 : vector<128xf32> to vector<1x128xf32>
    %c3 = arith.constant 3 : index
    %56 = memref.load %arg2[%c3] : memref<10xf32, #tpu.memory_space<smem>>
    %57 = vector.broadcast %56 : f32 to vector<8x128xf32>
    %58 = arith.mulf %0, %57 : vector<8x128xf32>
    %c3_16 = arith.constant 3 : index
    %59 = memref.load %arg3[%c3_16] : memref<10xf32, #tpu.memory_space<smem>>
    %60 = vector.broadcast %59 : f32 to vector<8x128xf32>
    %61 = arith.addf %58, %60 : vector<8x128xf32>
    %cst_17 = arith.constant 0.000000e+00 : f32
    %62 = vector.broadcast %cst_17 : f32 to vector<8x128xf32>
    %63 = arith.maximumf %61, %62 : vector<8x128xf32>
    %cst_18 = arith.constant 0.000000e+00 : f32
    %64 = vector.broadcast %cst_18 : f32 to vector<8x128xf32>
    %65 = arith.select %10, %63, %64 : vector<8x128xi1>, vector<8x128xf32>
    %cst_19 = arith.constant dense<0.000000e+00> : vector<128xf32>
    %66 = vector.multi_reduction <add>, %65, %cst_19 [0] : vector<8x128xf32> to vector<128xf32>
    %67 = vector.shape_cast %66 : vector<128xf32> to vector<1x128xf32>
    %68 = arith.mulf %65, %65 : vector<8x128xf32>
    %cst_20 = arith.constant dense<0.000000e+00> : vector<128xf32>
    %69 = vector.multi_reduction <add>, %68, %cst_20 [0] : vector<8x128xf32> to vector<128xf32>
    %70 = vector.shape_cast %69 : vector<128xf32> to vector<1x128xf32>
    %c4 = arith.constant 4 : index
    %71 = memref.load %arg2[%c4] : memref<10xf32, #tpu.memory_space<smem>>
    %72 = vector.broadcast %71 : f32 to vector<8x128xf32>
    %73 = arith.mulf %0, %72 : vector<8x128xf32>
    %c4_21 = arith.constant 4 : index
    %74 = memref.load %arg3[%c4_21] : memref<10xf32, #tpu.memory_space<smem>>
    %75 = vector.broadcast %74 : f32 to vector<8x128xf32>
    %76 = arith.addf %73, %75 : vector<8x128xf32>
    %cst_22 = arith.constant 0.000000e+00 : f32
    %77 = vector.broadcast %cst_22 : f32 to vector<8x128xf32>
    %78 = arith.maximumf %76, %77 : vector<8x128xf32>
    %cst_23 = arith.constant 0.000000e+00 : f32
    %79 = vector.broadcast %cst_23 : f32 to vector<8x128xf32>
    %80 = arith.select %10, %78, %79 : vector<8x128xi1>, vector<8x128xf32>
    %cst_24 = arith.constant dense<0.000000e+00> : vector<128xf32>
    %81 = vector.multi_reduction <add>, %80, %cst_24 [0] : vector<8x128xf32> to vector<128xf32>
    %82 = vector.shape_cast %81 : vector<128xf32> to vector<1x128xf32>
    %83 = arith.mulf %80, %80 : vector<8x128xf32>
    %cst_25 = arith.constant dense<0.000000e+00> : vector<128xf32>
    %84 = vector.multi_reduction <add>, %83, %cst_25 [0] : vector<8x128xf32> to vector<128xf32>
    %85 = vector.shape_cast %84 : vector<128xf32> to vector<1x128xf32>
    %c5 = arith.constant 5 : index
    %86 = memref.load %arg2[%c5] : memref<10xf32, #tpu.memory_space<smem>>
    %87 = vector.broadcast %86 : f32 to vector<8x128xf32>
    %88 = arith.mulf %0, %87 : vector<8x128xf32>
    %c5_26 = arith.constant 5 : index
    %89 = memref.load %arg3[%c5_26] : memref<10xf32, #tpu.memory_space<smem>>
    %90 = vector.broadcast %89 : f32 to vector<8x128xf32>
    %91 = arith.addf %88, %90 : vector<8x128xf32>
    %cst_27 = arith.constant 0.000000e+00 : f32
    %92 = vector.broadcast %cst_27 : f32 to vector<8x128xf32>
    %93 = arith.maximumf %91, %92 : vector<8x128xf32>
    %cst_28 = arith.constant 0.000000e+00 : f32
    %94 = vector.broadcast %cst_28 : f32 to vector<8x128xf32>
    %95 = arith.select %10, %93, %94 : vector<8x128xi1>, vector<8x128xf32>
    %cst_29 = arith.constant dense<0.000000e+00> : vector<128xf32>
    %96 = vector.multi_reduction <add>, %95, %cst_29 [0] : vector<8x128xf32> to vector<128xf32>
    %97 = vector.shape_cast %96 : vector<128xf32> to vector<1x128xf32>
    %98 = arith.mulf %95, %95 : vector<8x128xf32>
    %cst_30 = arith.constant dense<0.000000e+00> : vector<128xf32>
    %99 = vector.multi_reduction <add>, %98, %cst_30 [0] : vector<8x128xf32> to vector<128xf32>
    %100 = vector.shape_cast %99 : vector<128xf32> to vector<1x128xf32>
    %c6 = arith.constant 6 : index
    %101 = memref.load %arg2[%c6] : memref<10xf32, #tpu.memory_space<smem>>
    %102 = vector.broadcast %101 : f32 to vector<8x128xf32>
    %103 = arith.mulf %0, %102 : vector<8x128xf32>
    %c6_31 = arith.constant 6 : index
    %104 = memref.load %arg3[%c6_31] : memref<10xf32, #tpu.memory_space<smem>>
    %105 = vector.broadcast %104 : f32 to vector<8x128xf32>
    %106 = arith.addf %103, %105 : vector<8x128xf32>
    %cst_32 = arith.constant 0.000000e+00 : f32
    %107 = vector.broadcast %cst_32 : f32 to vector<8x128xf32>
    %108 = arith.maximumf %106, %107 : vector<8x128xf32>
    %cst_33 = arith.constant 0.000000e+00 : f32
    %109 = vector.broadcast %cst_33 : f32 to vector<8x128xf32>
    %110 = arith.select %10, %108, %109 : vector<8x128xi1>, vector<8x128xf32>
    %cst_34 = arith.constant dense<0.000000e+00> : vector<128xf32>
    %111 = vector.multi_reduction <add>, %110, %cst_34 [0] : vector<8x128xf32> to vector<128xf32>
    %112 = vector.shape_cast %111 : vector<128xf32> to vector<1x128xf32>
    %113 = arith.mulf %110, %110 : vector<8x128xf32>
    %cst_35 = arith.constant dense<0.000000e+00> : vector<128xf32>
    %114 = vector.multi_reduction <add>, %113, %cst_35 [0] : vector<8x128xf32> to vector<128xf32>
    %115 = vector.shape_cast %114 : vector<128xf32> to vector<1x128xf32>
    %c7 = arith.constant 7 : index
    %116 = memref.load %arg2[%c7] : memref<10xf32, #tpu.memory_space<smem>>
    %117 = vector.broadcast %116 : f32 to vector<8x128xf32>
    %118 = arith.mulf %0, %117 : vector<8x128xf32>
    %c7_36 = arith.constant 7 : index
    %119 = memref.load %arg3[%c7_36] : memref<10xf32, #tpu.memory_space<smem>>
    %120 = vector.broadcast %119 : f32 to vector<8x128xf32>
    %121 = arith.addf %118, %120 : vector<8x128xf32>
    %cst_37 = arith.constant 0.000000e+00 : f32
    %122 = vector.broadcast %cst_37 : f32 to vector<8x128xf32>
    %123 = arith.maximumf %121, %122 : vector<8x128xf32>
    %cst_38 = arith.constant 0.000000e+00 : f32
    %124 = vector.broadcast %cst_38 : f32 to vector<8x128xf32>
    %125 = arith.select %10, %123, %124 : vector<8x128xi1>, vector<8x128xf32>
    %cst_39 = arith.constant dense<0.000000e+00> : vector<128xf32>
    %126 = vector.multi_reduction <add>, %125, %cst_39 [0] : vector<8x128xf32> to vector<128xf32>
    %127 = vector.shape_cast %126 : vector<128xf32> to vector<1x128xf32>
    %128 = arith.mulf %125, %125 : vector<8x128xf32>
    %cst_40 = arith.constant dense<0.000000e+00> : vector<128xf32>
    %129 = vector.multi_reduction <add>, %128, %cst_40 [0] : vector<8x128xf32> to vector<128xf32>
    %130 = vector.shape_cast %129 : vector<128xf32> to vector<1x128xf32>
    %c8 = arith.constant 8 : index
    %131 = memref.load %arg2[%c8] : memref<10xf32, #tpu.memory_space<smem>>
    %132 = vector.broadcast %131 : f32 to vector<8x128xf32>
    %133 = arith.mulf %0, %132 : vector<8x128xf32>
    %c8_41 = arith.constant 8 : index
    %134 = memref.load %arg3[%c8_41] : memref<10xf32, #tpu.memory_space<smem>>
    %135 = vector.broadcast %134 : f32 to vector<8x128xf32>
    %136 = arith.addf %133, %135 : vector<8x128xf32>
    %cst_42 = arith.constant 0.000000e+00 : f32
    %137 = vector.broadcast %cst_42 : f32 to vector<8x128xf32>
    %138 = arith.maximumf %136, %137 : vector<8x128xf32>
    %cst_43 = arith.constant 0.000000e+00 : f32
    %139 = vector.broadcast %cst_43 : f32 to vector<8x128xf32>
    %140 = arith.select %10, %138, %139 : vector<8x128xi1>, vector<8x128xf32>
    %cst_44 = arith.constant dense<0.000000e+00> : vector<128xf32>
    %141 = vector.multi_reduction <add>, %140, %cst_44 [0] : vector<8x128xf32> to vector<128xf32>
    %142 = vector.shape_cast %141 : vector<128xf32> to vector<1x128xf32>
    %143 = arith.mulf %140, %140 : vector<8x128xf32>
    %cst_45 = arith.constant dense<0.000000e+00> : vector<128xf32>
    %144 = vector.multi_reduction <add>, %143, %cst_45 [0] : vector<8x128xf32> to vector<128xf32>
    %145 = vector.shape_cast %144 : vector<128xf32> to vector<1x128xf32>
    %c9 = arith.constant 9 : index
    %146 = memref.load %arg2[%c9] : memref<10xf32, #tpu.memory_space<smem>>
    %147 = vector.broadcast %146 : f32 to vector<8x128xf32>
    %148 = arith.mulf %0, %147 : vector<8x128xf32>
    %c9_46 = arith.constant 9 : index
    %149 = memref.load %arg3[%c9_46] : memref<10xf32, #tpu.memory_space<smem>>
    %150 = vector.broadcast %149 : f32 to vector<8x128xf32>
    %151 = arith.addf %148, %150 : vector<8x128xf32>
    %cst_47 = arith.constant 0.000000e+00 : f32
    %152 = vector.broadcast %cst_47 : f32 to vector<8x128xf32>
    %153 = arith.maximumf %151, %152 : vector<8x128xf32>
    %cst_48 = arith.constant 0.000000e+00 : f32
    %154 = vector.broadcast %cst_48 : f32 to vector<8x128xf32>
    %155 = arith.select %10, %153, %154 : vector<8x128xi1>, vector<8x128xf32>
    %cst_49 = arith.constant dense<0.000000e+00> : vector<128xf32>
    %156 = vector.multi_reduction <add>, %155, %cst_49 [0] : vector<8x128xf32> to vector<128xf32>
    %157 = vector.shape_cast %156 : vector<128xf32> to vector<1x128xf32>
    %158 = arith.mulf %155, %155 : vector<8x128xf32>
    %cst_50 = arith.constant dense<0.000000e+00> : vector<128xf32>
    %159 = vector.multi_reduction <add>, %158, %cst_50 [0] : vector<8x128xf32> to vector<128xf32>
    %160 = vector.shape_cast %159 : vector<128xf32> to vector<1x128xf32>
    %161 = tpu.concatenate %22, %37, %52, %67, %82, %97, %112, %127, %142, %157, %25, %40, %55, %70, %85, %100 in 0 : vector<1x128xf32>, vector<1x128xf32>, vector<1x128xf32>, vector<1x128xf32>, vector<1x128xf32>, vector<1x128xf32>, vector<1x128xf32>, vector<1x128xf32>, vector<1x128xf32>, vector<1x128xf32>, vector<1x128xf32>, vector<1x128xf32>, vector<1x128xf32>, vector<1x128xf32>, vector<1x128xf32>, vector<1x128xf32> -> vector<16x128xf32>
    %162 = tpu.concatenate %115, %130, %145, %160 in 0 : vector<1x128xf32>, vector<1x128xf32>, vector<1x128xf32>, vector<1x128xf32> -> vector<4x128xf32>
    %163 = tpu.concatenate %161, %162 in 0 : vector<16x128xf32>, vector<4x128xf32> -> vector<20x128xf32>
    %c0_i32 = arith.constant 0 : i32
    %164 = arith.cmpi eq, %arg0, %c0_i32 : i32
    %165 = arith.extui %164 : i1 to i32
    %c0_i32_51 = arith.constant 0 : i32
    %166 = arith.cmpi ne, %165, %c0_i32_51 : i32
    scf.if %166 {
      %c0_54 = arith.constant 0 : index
      %c0_55 = arith.constant 0 : index
      %170 = vector.load %arg4[%c0_54, %c0_55] : memref<20x128xf32, #tpu.memory_space<vmem>>, vector<20x128xf32>
      tpu.vector_store %arg4[%c0_54, %c0_55], %163 {strides = array<i32>} : memref<20x128xf32, #tpu.memory_space<vmem>>, vector<20x128xf32>,
    } else {
    }
    %c0_i32_52 = arith.constant 0 : i32
    %167 = arith.cmpi sgt, %arg0, %c0_i32_52 : i32
    %168 = arith.extui %167 : i1 to i32
    %c0_i32_53 = arith.constant 0 : i32
    %169 = arith.cmpi ne, %168, %c0_i32_53 : i32
    scf.if %169 {
      %c0_54 = arith.constant 0 : index
      %c0_55 = arith.constant 0 : index
      %170 = vector.load %arg4[%c0_54, %c0_55] : memref<20x128xf32, #tpu.memory_space<vmem>>, vector<20x128xf32>
      %171 = arith.addf %170, %163 : vector<20x128xf32>
      %c0_56 = arith.constant 0 : index
      %c0_57 = arith.constant 0 : index
      %172 = vector.load %arg4[%c0_56, %c0_57] : memref<20x128xf32, #tpu.memory_space<vmem>>, vector<20x128xf32>
      tpu.vector_store %arg4[%c0_56, %c0_57], %171 {strides = array<i32>} : memref<20x128xf32, #tpu.memory_space<vmem>>, vector<20x128xf32>,
    } else {
    }
    return
  }
  func.func @transform_0(%arg0: i32) -> (i32, i32) {
    %c0_i32 = arith.constant 0 : i32
    %c0_i32_0 = arith.constant 0 : i32
    return %arg0, %c0_i32 : i32, i32
  }
  func.func @transform_1(%arg0: i32) -> i32 {
    %c0_i32 = arith.constant 0 : i32
    %c0_i32_0 = arith.constant 0 : i32
    return %c0_i32 : i32
  }
  func.func @transform_2(%arg0: i32) -> i32 {
    %c0_i32 = arith.constant 0 : i32
    %c0_i32_0 = arith.constant 0 : i32
    return %c0_i32 : i32
  }
  func.func @transform_3(%arg0: i32) -> (i32, i32) {
    %c0_i32 = arith.constant 0 : i32
    %c0_i32_0 = arith.constant 0 : i32
    %c0_i32_1 = arith.constant 0 : i32
    return %c0_i32, %c0_i32_0 : i32, i32
  }
}

</mosaic_0001>

<bundles_post_ra>
// kernel: tpu_custom_call.1
= control target key start
LH: loop header
LB: loop body
LE: loop exit
PB: predicated region body
PF: predicated region fallthrough
CT: control target
= control target key end

     0   :  { %8 = vsyncpa [#allocation3], 0  ;;  %s613_s0 = inlined_call_operand.hbm [shape: f32[8,128], index: 0, kind: input, shape index: {}]   ;;  %s614_s1 = inlined_call_operand.vmem [shape: f32[10], index: 1, kind: input, shape index: {}]   ;;  %s615_s2 = inlined_call_operand.vmem [shape: f32[10], index: 2, kind: input, shape index: {}]   ;;  %s616_s3 = inlined_call_operand.hbm [shape: f32[20,128], index: 3, kind: output, shape index: {}]  }
   0x1   :  { %9 = vsyncpa [#allocation5], 0 }
   0x2   :  { %10 = vsyncpa [#allocation8], 0 }
   0x3   :  { %11 = vsyncpa [#allocation4], 0  ;;  %s28_s14 = sshll.u32 %s614_s1, 4  ;;  %s436_s15 = smov [#allocation2]   ;;  %s29_s14 = int_to_ptr.vmem [resolvable:$true] %s28_s14 }
   0x4   :  { %s18_s16 = sshll.u32 %s436_s15, 4  ;;  %s360_s19 = scalar_lea.hbm %s613_s0, 128  ;;  %s19_s16 = int_to_ptr.vmem [resolvable:$true] %s18_s16 }
   0x5   :  { %p361_p0 = scmp.ne.s32.totalorder %s613_s0, %s360_s19  ;;  %p364_p1 = scmp.lt.u32.totalorder %s360_s19, %s613_s0 }
   0x7   :  { %p366_p2 = pnand %p364_p1, %p361_p0 }
   0x9   :  { %369 = shalt.err (!%p366_p2)
}
   0xa   :  { %s370_s24 = scalar_lea.vmem %s19_s16, 128  ;;  %p375_p4 = scmp.lt.s32.totalorder %s19_s16, %s19_s16 }
   0xb   :  { %p371_p3 = scmp.ne.s32.totalorder %s19_s16, %s370_s24  ;;  %p376_p5 = scmp.lt.s32.totalorder %s370_s24, %s370_s24 }
   0xd   :  { %p377_p6 = por %p376_p5, %p375_p4 }
   0xf   :  { %p378_p7 = pnand %p377_p6, %p371_p3 }
  0x11   :  { %381 = shalt.err (!%p378_p7)
}
  0x12   :  { %21 = dma.hbm_to_vmem [thread:$0]  %s613_s0, 128, %s19_s16, [#allocation3]  }
  0x13   :  { %s382_s26 = scalar_lea.vmem %s29_s14, 16  ;;  %p387_p9 = scmp.lt.s32.totalorder %s29_s14, %s29_s14 }
  0x14   :  { %p383_p8 = scmp.ne.s32.totalorder %s29_s14, %s382_s26  ;;  %p388_p10 = scmp.lt.s32.totalorder %s382_s26, %s382_s26 }
  0x16   :  { %p389_p11 = por %p388_p10, %p387_p9 }
  0x18   :  { %p390_p12 = pnand %p389_p11, %p383_p8 }
  0x1a   :  { %393 = shalt.err (!%p390_p12)
}
  0x1b   :  { %s437_s27 = smov [#allocation6]   ;;  %s38_s30 = sshll.u32 %s615_s2, 4  ;;  %s39_s30 = int_to_ptr.vmem [resolvable:$true] %s38_s30 }
  0x1c   :  { %31 = dma.vmem_to_smem %s29_s14, 16, %s437_s27, [#allocation5]  }
  0x1d   :  { %s394_s4 = scalar_lea.vmem %s39_s30, 16  ;;  %p399_p0 = scmp.lt.s32.totalorder %s39_s30, %s39_s30 }
  0x1e   :  { %p395_p13 = scmp.ne.s32.totalorder %s39_s30, %s394_s4  ;;  %p400_p1 = scmp.lt.s32.totalorder %s394_s4, %s394_s4 }
  0x20   :  { %p401_p2 = por %p400_p1, %p399_p0 }
  0x22   :  { %p402_p3 = pnand %p401_p2, %p395_p13 }
  0x24   :  { %405 = shalt.err (!%p402_p3)
}
  0x25   :  { %s438_s0 = smov [#allocation7]  }
  0x26   :  { %41 = dma.vmem_to_smem %s39_s30, 16, %s438_s0, [#allocation8]  }
  0x27   :  { %428 = dma.done.wait [#allocation3], 128  }
  0x28   :  { %429 = vsyncadd [#allocation3], 4294967168 }
  0x29   :  { %430 = dma.done.wait [#allocation5], 16  }
  0x2a   :  { %431 = vsyncadd [#allocation5], 4294967280 }
  0x2b   :  { %432 = dma.done.wait [#allocation8], 16  }
  0x2c   :  { %433 = vsyncadd [#allocation8], 4294967280 }
  0x2d   :  { %51 = sfence }
  0x2e   :  { %v54_v0 = vlaneseq  ;;  %s63_s5 = sld [smem:[#allocation6]]  ;;  %s336_s6 = sld [smem:[#allocation6 + $0x1]]  ;;  %v482_v3 = vld [vmem:[#allocation2] sm:$0xff]  ;;  %vm273_vm1 = vcmask 1040384   ;;  %vm275_vm2 = vcmask 1041408   ;;  %vm277_vm3 = vcmask 1042432  }
  0x2f   :  { %s66_s2 = sld [smem:[#allocation7]]  ;;  %s337_s7 = sld [smem:[#allocation7 + $0x1]]  ;;  %vm279_vm4 = vcmask 1043456   ;;  %vm281_vm5 = vcmask 1044480   ;;  %vm283_vm6 = vcmask 1045504   ;;  %vm285_vm7 = vcmask 1046528  }
  0x30   :  { %v55_v1 = vshrl.u32 %v54_v0, 7  ;;  %v57_v2 = vand.u32 127, %v54_v0  ;;  %s338_s8 = sld [smem:[#allocation6 + $0x2]]  ;;  %s340_s10 = sld [smem:[#allocation6 + $0x3]] }
  0x31   :  { %s339_s9 = sld [smem:[#allocation7 + $0x2]]  ;;  %s480_s11 = sld [smem:[#allocation7 + $0x3]] }
  0x32   :  { %v58_v4 = vmul.u32 128, %v55_v1  ;;  %s342_s12 = sld [smem:[#allocation6 + $0x4]]  ;;  %s344_s14 = sld [smem:[#allocation6 + $0x5]] }
  0x33   :  { %s484_s13 = sld [smem:[#allocation7 + $0x4]]  ;;  %s486_s15 = sld [smem:[#allocation7 + $0x5]] }
  0x34   :  { %v488_v5 = vadd.s32 %v58_v4, %v57_v2  ;;  %v64_v6 = vstv %s63_s5  ;;  %s490_s16 = sld [smem:[#allocation6 + $0x6]]  ;;  %v85_v9 = vstv %s336_s6  ;;  %s504_s18 = sld [smem:[#allocation6 + $0x7]] }
  0x35   :  { %v67_v7 = vstv %s66_s2  ;;  %v65_v8 = vmul.f32 %v64_v6, %v482_v3  ;;  %v88_v10 = vstv %s337_s7  ;;  %v86_v11 = vmul.f32 %v85_v9, %v482_v3  ;;  %s497_s17 = sld [smem:[#allocation7 + $0x6]]  ;;  %s535_s19 = sld [smem:[#allocation7 + $0x7]] }
  0x36   :  { %vm62_vm0 = vcmp.lt.s32.totalorder %v488_v5, 8  ;;  %v106_v12 = vstv %s338_s8  ;;  %v127_v16 = vstv %s340_s10  ;;  %s350_s20 = sld [smem:[#allocation6 + $0x8]]  ;;  %s566_s22 = sld [smem:[#allocation6 + $0x9]] }
  0x37   :  { %v109_v13 = vstv %s339_s9  ;;  %v68_v14 = vadd.f32 %v67_v7, %v65_v8  ;;  %v107_v15 = vmul.f32 %v106_v12, %v482_v3  ;;  %v130_v17 = vstv %s480_s11  ;;  %s351_s21 = sld [smem:[#allocation7 + $0x8]]  ;;  %s568_s23 = sld [smem:[#allocation7 + $0x9]] }
  0x38   :  { %v89_v18 = vadd.f32 %v88_v10, %v86_v11  ;;  %v128_v19 = vmul.f32 %v127_v16, %v482_v3  ;;  %v148_v20 = vstv %s342_s12  ;;  %v169_v25 = vstv %s344_s14  ;;  %s439_s24 = smov [#allocation9]  }
  0x39   :  { %v151_v21 = vstv %s484_s13  ;;  %v69_v22 = vmax.f32 %v68_v14, 0.0  ;;  %v110_v23 = vadd.f32 %v109_v13, %v107_v15  ;;  %v149_v24 = vmul.f32 %v148_v20, %v482_v3  ;;  %s322_s1 = sshll.u32 %s439_s24, 4  ;;  %s323_s1 = int_to_ptr.vmem [resolvable:$true] %s322_s1 }
  0x3a   :  { %v90_v26 = vmax.f32 %v89_v18, 0.0  ;;  %v131_v27 = vadd.f32 %v130_v17, %v128_v19  ;;  %v170_v28 = vmul.f32 %v169_v25, %v482_v3  ;;  %v172_v29 = vstv %s486_s15  ;;  %s406_s25 = scalar_lea.vmem %s323_s1, 384  ;;  %p411_p5 = scmp.lt.s32.totalorder %s323_s1, %s323_s1 }
  0x3b   :  { %v508_v30 = vsel %vm62_vm0, %v69_v22, 0.0  ;;  %v111_v31 = vmax.f32 %v110_v23, 0.0  ;;  %v152_v32 = vadd.f32 %v151_v21, %v149_v24  ;;  %v190_v33 = vstv %s490_s16  ;;  %p407_p4 = scmp.ne.s32.totalorder %s323_s1, %s406_s25  ;;  %p412_p6 = scmp.lt.s32.totalorder %s406_s25, %s406_s25 }
  0x3c   :  { %v71_v34 = vrot.slane %v508_v30, 4  ;;  %v514_v35 = vsel %vm62_vm0, %v90_v26, 0.0  ;;  %v132_v36 = vmax.f32 %v131_v27, 0.0  ;;  %v173_v37 = vadd.f32 %v172_v29, %v170_v28 }
  0x3d   :  { %v92_v38 = vrot.slane %v514_v35, 4  ;;  %v519_v39 = vsel %vm62_vm0, %v111_v31, 0.0  ;;  %v153_v40 = vmax.f32 %v152_v32, 0.0  ;;  %v191_v41 = vmul.f32 %v190_v33, %v482_v3  ;;  %p413_p7 = por %p412_p6, %p411_p5 }
  0x3e   :  { %v72_v42 = vadd.f32 %v71_v34, %v508_v30  ;;  %v113_v43 = vrot.slane %v519_v39, 4  ;;  %v526_v44 = vsel %vm62_vm0, %v132_v36, 0.0  ;;  %v174_v45 = vmax.f32 %v173_v37, 0.0 }
  0x3f   :  { %v93_v46 = vadd.f32 %v92_v38, %v514_v35  ;;  %v134_v47 = vrot.slane %v526_v44, 4  ;;  %v532_v48 = vsel %vm62_vm0, %v153_v40, 0.0  ;;  %v193_v49 = vstv %s497_s17  ;;  %p414_p8 = pnand %p413_p7, %p407_p4 }
  0x40   :  { %v73_v50 = vrot.slane %v72_v42, 2  ;;  %v114_v51 = vadd.f32 %v113_v43, %v519_v39  ;;  %v155_v52 = vrot.slane %v532_v48, 4  ;;  %v541_v53 = vsel %vm62_vm0, %v174_v45, 0.0 }
  0x41   :  { %v94_v54 = vrot.slane %v93_v46, 2  ;;  %v135_v55 = vadd.f32 %v134_v47, %v526_v44  ;;  %v176_v56 = vrot.slane %v541_v53, 4  ;;  %v194_v57 = vadd.f32 %v193_v49, %v191_v41 }
  0x42   :  { %v74_v58 = vadd.f32 %v73_v50, %v72_v42  ;;  %v115_v59 = vrot.slane %v114_v51, 2  ;;  %v156_v60 = vadd.f32 %v155_v52, %v532_v48  ;;  %v211_v61 = vstv %s504_s18 }
  0x43   :  { %v95_v62 = vadd.f32 %v94_v54, %v93_v46  ;;  %v136_v63 = vrot.slane %v135_v55, 2  ;;  %v177_v0 = vadd.f32 %v176_v56, %v541_v53  ;;  %v195_v1 = vmax.f32 %v194_v57, 0.0 }
  0x44   :  { %v75_v2 = vrot.slane %v74_v58, 1  ;;  %v116_v4 = vadd.f32 %v115_v59, %v114_v51  ;;  %v157_v6 = vrot.slane %v156_v60, 2  ;;  %v212_v7 = vmul.f32 %v211_v61, %v482_v3 }
  0x45   :  { %v96_v8 = vrot.slane %v95_v62, 1  ;;  %v137_v9 = vadd.f32 %v136_v63, %v135_v55  ;;  %v178_v10 = vrot.slane %v177_v0, 2  ;;  %v551_v11 = vsel %vm62_vm0, %v195_v1, 0.0 }
  0x46   :  { %v76_v12 = vadd.f32 %v75_v2, %v74_v58  ;;  %v117_v13 = vrot.slane %v116_v4, 1  ;;  %v158_v14 = vadd.f32 %v157_v6, %v156_v60  ;;  %v197_v15 = vrot.slane %v551_v11, 4 }
  0x47   :  { %v97_v16 = vadd.f32 %v96_v8, %v95_v62  ;;  %v138_v17 = vrot.slane %v137_v9, 1  ;;  %v179_v18 = vadd.f32 %v178_v10, %v177_v0  ;;  %v214_v19 = vstv %s535_s19 }
  0x48   :  { %v118_v20 = vadd.f32 %v117_v13, %v116_v4  ;;  %v159_v21 = vrot.slane %v158_v14, 1  ;;  %v198_v22 = vadd.f32 %v197_v15, %v551_v11  ;;  %v215_v23 = vadd.f32 %v214_v19, %v212_v7 }
  0x49   :  { %v139_v24 = vadd.f32 %v138_v17, %v137_v9  ;;  %v274_v25 = vsel %vm273_vm1, %v76_v12, %v97_v16  ;;  %v180_v29 = vrot.slane %v179_v18, 1  ;;  %v77_v37 = vmul.f32 %v508_v30, %v508_v30 }
  0x4a   :  { %v199_v26 = vrot.slane %v198_v22, 2  ;;  %v216_v27 = vmax.f32 %v215_v23, 0.0  ;;  %v276_v28 = vsel %vm275_vm2, %v274_v25, %v118_v20  ;;  %v160_v31 = vadd.f32 %v159_v21, %v158_v14 }
  0x4b   :  { %v278_v36 = vsel %vm277_vm3, %v276_v28, %v139_v24  ;;  %v181_v40 = vadd.f32 %v180_v29, %v179_v18  ;;  %v98_v43 = vmul.f32 %v514_v35, %v514_v35  ;;  %v78_v46 = vrot.slane %v77_v37, 4 }
  0x4c   :  { %v200_v32 = vadd.f32 %v199_v26, %v198_v22  ;;  %v217_v33 = vsel %vm62_vm0, %v216_v27, 0.0  ;;  %v280_v42 = vsel %vm279_vm4, %v278_v36, %v160_v31  ;;  %v119_v50 = vmul.f32 %v519_v39, %v519_v39 }
  0x4d   :  { %v218_v34 = vrot.slane %v217_v33, 4  ;;  %v282_v30 = vsel %vm281_vm5, %v280_v42, %v181_v40  ;;  %v99_v51 = vrot.slane %v98_v43, 4  ;;  %v140_v52 = vmul.f32 %v526_v44, %v526_v44 }
  0x4e   :  { %v201_v38 = vrot.slane %v200_v32, 1  ;;  %v232_v54 = vstv %s350_s20  ;;  %v79_v55 = vadd.f32 %v78_v46, %v77_v37  ;;  %v161_v56 = vmul.f32 %v532_v48, %v532_v48 }
  0x4f   :  { %v219_v41 = vadd.f32 %v218_v34, %v217_v33  ;;  %v182_v58 = vmul.f32 %v541_v53, %v541_v53  ;;  %v233_v59 = vmul.f32 %v232_v54, %v482_v3  ;;  %v224_v60 = vmul.f32 %v217_v33, %v217_v33 }
  0x50   :  { %v202_v47 = vadd.f32 %v201_v38, %v200_v32  ;;  %v120_v61 = vrot.slane %v119_v50, 4  ;;  %v235_v44 = vstv %s351_s21  ;;  %v100_v62 = vadd.f32 %v99_v51, %v98_v43 }
  0x51   :  { %v220_v45 = vrot.slane %v219_v41, 2  ;;  %v141_v63 = vrot.slane %v140_v52, 4  ;;  %v236_v0 = vadd.f32 %v235_v44, %v233_v59  ;;  %v80_v2 = vrot.slane %v79_v55, 2 }
  0x52   :  { %v284_v57 = vsel %vm283_vm6, %v282_v30, %v202_v47  ;;  %v162_v48 = vrot.slane %v161_v56, 4  ;;  %v253_v4 = vstv %s566_s22  ;;  %v183_v6 = vrot.slane %v182_v58, 4 }
  0x53   :  { %v221_v49 = vadd.f32 %v220_v45, %v219_v41  ;;  %v237_v7 = vmax.f32 %v236_v0, 0.0  ;;  %v254_v53 = vmul.f32 %v253_v4, %v482_v3  ;;  %v256_v8 = vstv %s568_s23 }
  0x54   :  { %v121_v9 = vadd.f32 %v120_v61, %v119_v50  ;;  %v203_v10 = vmul.f32 %v551_v11, %v551_v11  ;;  %v225_v12 = vrot.slane %v224_v60, 4  ;;  %v101_v13 = vrot.slane %v100_v62, 2 }
  0x55   :  { %v222_v35 = vrot.slane %v221_v49, 1  ;;  %v142_v14 = vadd.f32 %v141_v63, %v140_v52  ;;  %v238_v15 = vsel %vm62_vm0, %v237_v7, 0.0  ;;  %v257_v16 = vadd.f32 %v256_v8, %v254_v53 }
  0x56   :  { %v239_v17 = vrot.slane %v238_v15, 4  ;;  %v204_v18 = vrot.slane %v203_v10, 4  ;;  %v226_v19 = vadd.f32 %v225_v12, %v224_v60  ;;  %v245_v20 = vmul.f32 %v238_v15, %v238_v15 }
  0x57   :  { %v223_v39 = vadd.f32 %v222_v35, %v221_v49  ;;  %v81_v21 = vadd.f32 %v80_v2, %v79_v55  ;;  %v163_v22 = vadd.f32 %v162_v48, %v161_v56  ;;  %v184_v23 = vadd.f32 %v183_v6, %v182_v58 }
  0x58   :  { %v258_v3 = vmax.f32 %v257_v16, 0.0  ;;  %v240_v24 = vadd.f32 %v239_v17, %v238_v15  ;;  %v205_v25 = vadd.f32 %v204_v18, %v203_v10  ;;  %v227_v26 = vrot.slane %v226_v19, 2 }
  0x59   :  { %v286_v1 = vsel %vm285_vm7, %v284_v57, %v223_v39  ;;  %v246_v27 = vrot.slane %v245_v20, 4  ;;  %v102_v11 = vadd.f32 %v101_v13, %v100_v62  ;;  %v122_v28 = vrot.slane %v121_v9, 2 }
  0x5a   :  { %301 = vst [vmem:[#allocation9] sm:$0xff] %v286_v1  ;;  %v143_v29 = vrot.slane %v142_v14, 2  ;;  %v259_v31 = vsel %vm62_vm0, %v258_v3, 0.0  ;;  %v241_v32 = vrot.slane %v240_v24, 2  ;;  %v206_v34 = vrot.slane %v205_v25, 2 }
  0x5b   :  { %v260_v33 = vrot.slane %v259_v31, 4  ;;  %v228_v36 = vadd.f32 %v227_v26, %v226_v19  ;;  %v164_v37 = vrot.slane %v163_v22, 2  ;;  %v185_v38 = vrot.slane %v184_v23, 2 }
  0x5c   :  { %v247_v40 = vadd.f32 %v246_v27, %v245_v20  ;;  %v266_v41 = vmul.f32 %v259_v31, %v259_v31  ;;  %v242_v42 = vadd.f32 %v241_v32, %v240_v24  ;;  %v207_v45 = vadd.f32 %v206_v34, %v205_v25 }
  0x5d   :  { %v261_v43 = vadd.f32 %v260_v33, %v259_v31  ;;  %v229_v46 = vrot.slane %v228_v36, 1  ;;  %v82_v47 = vrot.slane %v81_v21, 1  ;;  %v123_v49 = vadd.f32 %v122_v28, %v121_v9 }
  0x5e   :  { %v248_v30 = vrot.slane %v247_v40, 2  ;;  %v267_v50 = vrot.slane %v266_v41, 4  ;;  %v144_v51 = vadd.f32 %v143_v29, %v142_v14  ;;  %v243_v52 = vrot.slane %v242_v42, 1 }
  0x5f   :  { %v262_v5 = vrot.slane %v261_v43, 2  ;;  %v208_v54 = vrot.slane %v207_v45, 1  ;;  %v165_v35 = vadd.f32 %v164_v37, %v163_v22  ;;  %v230_v55 = vadd.f32 %v229_v46, %v228_v36 }
  0x60   :  { %v249_v56 = vadd.f32 %v248_v30, %v247_v40  ;;  %v268_v57 = vadd.f32 %v267_v50, %v266_v41  ;;  %v103_v58 = vrot.slane %v102_v11, 1  ;;  %v186_v59 = vadd.f32 %v185_v38, %v184_v23 }
  0x61   :  { %v263_v39 = vadd.f32 %v262_v5, %v261_v43  ;;  %v209_v60 = vadd.f32 %v208_v54, %v207_v45  ;;  %v124_v61 = vrot.slane %v123_v49, 1  ;;  %v83_v63 = vadd.f32 %v82_v47, %v81_v21 }
  0x62   :  { %v250_v44 = vrot.slane %v249_v56, 1  ;;  %v269_v62 = vrot.slane %v268_v57, 2  ;;  %v145_v0 = vrot.slane %v144_v51, 1  ;;  %v244_v1 = vadd.f32 %v243_v52, %v242_v42 }
  0x63   :  { %v264_v2 = vrot.slane %v263_v39, 1  ;;  %v166_v48 = vrot.slane %v165_v35, 1  ;;  %v294_v7 = vsel %vm273_vm1, %v209_v60, %v230_v55  ;;  %v104_v53 = vadd.f32 %v103_v58, %v102_v11 }
  0x64   :  { %v251_v4 = vadd.f32 %v250_v44, %v249_v56  ;;  %v270_v6 = vadd.f32 %v269_v62, %v268_v57  ;;  %v187_v8 = vrot.slane %v186_v59, 1  ;;  %v125_v10 = vadd.f32 %v124_v61, %v123_v49 }
  0x65   :  { %v265_v9 = vadd.f32 %v264_v2, %v263_v39  ;;  %v146_v13 = vadd.f32 %v145_v0, %v144_v51  ;;  %v167_v16 = vadd.f32 %v166_v48, %v165_v35 }
  0x66   :  { %v271_v12 = vrot.slane %v270_v6, 1  ;;  %v295_v15 = vsel %vm275_vm2, %v294_v7, %v251_v4  ;;  %v188_v19 = vadd.f32 %v187_v8, %v186_v59 }
  0x67   :  { %v287_v14 = vsel %vm273_vm1, %v244_v1, %v265_v9 }
  0x68   :  { %v288_v17 = vsel %vm275_vm2, %v287_v14, %v83_v63  ;;  %v272_v18 = vadd.f32 %v271_v12, %v270_v6 }
  0x69   :  { %v289_v20 = vsel %vm277_vm3, %v288_v17, %v104_v53 }
  0x6a   :  { %v290_v21 = vsel %vm279_vm4, %v289_v20, %v125_v10  ;;  %v296_v22 = vsel %vm277_vm3, %v295_v15, %v272_v18 }
  0x6b   :  { %v291_v23 = vsel %vm281_vm5, %v290_v21, %v146_v13  ;;  %303 = vst [vmem:[#allocation9 + $0x10] sm:$0xf] %v296_v22 }
  0x6c   :  { %v292_v3 = vsel %vm283_vm6, %v291_v23, %v167_v16 }
  0x6d   :  { %v293_v24 = vsel %vm285_vm7, %v292_v3, %v188_v19 }
  0x6e   :  { %302 = vst [vmem:[#allocation9 + $0x8] sm:$0xff] %v293_v24 }
  0x6f   :  { %417 = shalt.err (!%p414_p8)
}
  0x70   :  { %s418_s28 = scalar_lea.hbm %s616_s3, 384 }
  0x71   :  { %p419_p9 = scmp.ne.s32.totalorder %s616_s3, %s418_s28  ;;  %p422_p10 = scmp.lt.u32.totalorder %s418_s28, %s616_s3 }
  0x73   :  { %p424_p11 = pnand %p422_p10, %p419_p9 }
  0x75   :  { %427 = shalt.err (!%p424_p11)
}
  0x76   :  { %s440_s5 = smov 128   ;;  %s441_s2 = smov 8  }
  0x77   :  { %328 = dma.vmem_to_hbm [thread:$0]  %s323_s1, 384, %s616_s3, [#allocation4], %s440_s5, %s440_s5, %s441_s2  }
  0x78   :  { %434 = dma.done.wait [#allocation4], 384  }
  0x79   :  { %435 = vsyncadd [#allocation4], 4294966912 }
  0x7a   :  { %332 = vsyncpa [#allocation3], 1 }
  0x7b   :  { %333 = vsyncpa [#allocation4], 1 }
  0x7c   :  { %334 = vsyncpa [#allocation5], 1 }
  0x7d   :  { %335 = vsyncpa [#allocation8], 1 }

</bundles_post_ra>
